<compile_context>
chip_gen: v7x
topology: tpu7x:2x2x1
jax: 0.10.0
libtpu: 0.0.40
codegen_flags: <defaults>
</compile_context>

<pallas_src>
import functools

import jax
import jax.numpy as jnp
from jax.experimental import pallas as pl
from jax.experimental.pallas import tpu as pltpu

_LANES = 128


def _kl_kernel(mean_ref, log_std_ref, out_ref, acc_ref, *, scale):
    step = pl.program_id(0)

    @pl.when(step == 0)
    def _init():
        acc_ref[...] = jnp.zeros_like(acc_ref)

    # Compute in f32 (mandatory on v5e, better exp accuracy everywhere);
    # inputs may arrive as bf16 in HBM to halve memory traffic.
    mean = mean_ref[...].astype(jnp.float32)
    log_std = log_std_ref[...].astype(jnp.float32)
    # Elementwise term: 1 + 2*log_std - mean^2 - exp(2*log_std).
    # Zero-padded elements contribute exactly 0.
    term = 1.0 + 2.0 * log_std - mean * mean - jnp.exp(2.0 * log_std)

    # Steady state: VPU-only accumulate; defer all XLU work to the epilogue.
    acc_ref[...] += term

    @pl.when(step == pl.num_programs(0) - 1)
    def _finalize():
        total = jnp.sum(acc_ref[...])
        # Single fused scalar scale: (-0.5 / B) folded at trace time.
        out_ref[...] = jnp.full((1, 1), total * scale, jnp.float32)


def _round_up(x, m):
    return ((x + m - 1) // m) * m


def kl_divergence_loss(mean, log_std, *, max_tile_rows=1024):
    """Pallas implementation of KLDivergenceLoss.forward.

    mean, log_std: arrays of identical shape (..., D); sum over the last dim,
    mean over the rest. Returns a scalar float32.
    """
    assert mean.shape == log_std.shape
    n = mean.size
    d = mean.shape[-1]
    batch = max(n // d, 1)  # number of rows averaged by .mean()
    scale = -0.5 / float(batch)

    # Lane-dense layout: flatten and pad to a (rows_padded, 128) slab whose
    # row count divides evenly into tiles of `tile_rows` (multiple of 8).
    rows = _round_up(pl.cdiv(n, _LANES), 8)
    tile_rows = min(max_tile_rows, rows)          # ~1 MiB of f32 tiles max
    num_tiles = pl.cdiv(rows, tile_rows)
    rows_padded = num_tiles * tile_rows
    total_elems = rows_padded * _LANES

    def lane_dense(x):
        flat = x.reshape(-1)
        flat = jnp.pad(flat, (0, total_elems - n))  # zero-pad -> term == 0
        return flat.reshape(rows_padded, _LANES)

    mean2d = lane_dense(mean)
    log_std2d = lane_dense(log_std)

    out = pl.pallas_call(
        functools.partial(_kl_kernel, scale=scale),
        out_shape=jax.ShapeDtypeStruct((1, 1), jnp.float32),
        grid_spec=pltpu.PrefetchScalarGridSpec(
            num_scalar_prefetch=0,
            grid=(num_tiles,),
            in_specs=[
                pl.BlockSpec((tile_rows, _LANES), lambda i: (i, 0)),
                pl.BlockSpec((tile_rows, _LANES), lambda i: (i, 0)),
            ],
            out_specs=pl.BlockSpec((1, 1), lambda i: (0, 0)),
            scratch_shapes=[pltpu.VMEM((tile_rows, _LANES), jnp.float32)],
        ),
        compiler_params=pltpu.CompilerParams(
            # Reduction axis: output block is resident across the grid.
            dimension_semantics=("arbitrary",),
        ),
    )(mean2d, log_std2d)
    return out[0, 0]


def kl_divergence_loss_ref(mean, log_std):
    """Pure-JAX reference mirroring the PyTorch code exactly."""
    kl = -0.5 * jnp.sum(
        1.0 + 2.0 * log_std - mean.astype(jnp.float32) ** 2
        - jnp.exp(2.0 * log_std.astype(jnp.float32)),
        axis=-1,
    )
    return jnp.mean(kl)


if __name__ == "__main__":
    key = jax.random.PRNGKey(0)
    k_mean, k_logstd, k_mean2, k_logstd2 = jax.random.split(key, 4)

    # Small VAE-style latent: batch=8, latent_dim=32.
    B, D = 8, 32
    mean = jax.random.normal(k_mean, (B, D), dtype=jnp.float32)
    log_std = 0.1 * jax.random.normal(k_logstd, (B, D), dtype=jnp.float32)

    out = jax.block_until_ready(kl_divergence_loss(mean, log_std))
    ref = kl_divergence_loss_ref(mean, log_std)
    assert jnp.allclose(out, ref, rtol=1e-5, atol=1e-5), (out, ref)

    # Second check exercising a multi-step reduction grid (accumulator path)
    # and a non-multiple-of-128 last dim, still at small size.
    B2, D2 = 8, 160
    mean2 = jax.random.normal(k_mean2, (B2, D2), dtype=jnp.float32)
    log_std2 = 0.1 * jax.random.normal(k_logstd2, (B2, D2), dtype=jnp.float32)

    out2 = jax.block_until_ready(
        kl_divergence_loss(mean2, log_std2, max_tile_rows=8)
    )
    ref2 = kl_divergence_loss_ref(mean2, log_std2)
    assert jnp.allclose(out2, ref2, rtol=1e-5, atol=1e-5), (out2, ref2)

    print("KERNEL_OK")
</pallas_src>

<mosaic_0001>
module attributes {stable_mosaic.version = 11 : i64} {
  func.func @_kl_kernel(%arg0: i32, %arg1: memref<8x128xf32, #tpu.memory_space<vmem>>, %arg2: memref<8x128xf32, #tpu.memory_space<vmem>>, %arg3: memref<1x1xf32, #tpu.memory_space<vmem>>, %arg4: memref<8x128xf32, #tpu.memory_space<vmem>>) attributes {dimension_semantics = [#tpu.dimension_semantics<arbitrary>], iteration_bounds = array<i64: 1>, scalar_prefetch = 0 : i64, scratch_operands = 1 : i64, tpu.core_type = #tpu.core_type<tc>, window_params = [{transform_indices = @transform_0, window_bounds = array<i64: 8, 128>}, {transform_indices = @transform_1, window_bounds = array<i64: 8, 128>}, {pipeline_mode = #tpu.pipeline_mode<synchronous>, transform_indices = @transform_2, window_bounds = array<i64: 1, 1>}]} {
    %c0_i32 = arith.constant 0 : i32
    %0 = arith.cmpi eq, %arg0, %c0_i32 : i32
    %1 = arith.extui %0 : i1 to i32
    %c0_i32_0 = arith.constant 0 : i32
    %2 = arith.cmpi ne, %1, %c0_i32_0 : i32
    scf.if %2 {
      %cst_12 = arith.constant 0.000000e+00 : f32
      %21 = vector.broadcast %cst_12 : f32 to vector<8x128xf32>
      %c0_13 = arith.constant 0 : index
      %c0_14 = arith.constant 0 : index
      %22 = vector.load %arg4[%c0_13, %c0_14] : memref<8x128xf32, #tpu.memory_space<vmem>>, vector<8x128xf32>
      tpu.vector_store %arg4[%c0_13, %c0_14], %21 {strides = array<i32>} : memref<8x128xf32, #tpu.memory_space<vmem>>, vector<8x128xf32>,
    } else {
    }
    %c0 = arith.constant 0 : index
    %c0_1 = arith.constant 0 : index
    %3 = vector.load %arg1[%c0, %c0_1] : memref<8x128xf32, #tpu.memory_space<vmem>>, vector<8x128xf32>
    %c0_2 = arith.constant 0 : index
    %c0_3 = arith.constant 0 : index
    %4 = vector.load %arg2[%c0_2, %c0_3] : memref<8x128xf32, #tpu.memory_space<vmem>>, vector<8x128xf32>
    %cst = arith.constant 2.000000e+00 : f32
    %5 = vector.broadcast %cst : f32 to vector<8x128xf32>
    %6 = arith.mulf %5, %4 : vector<8x128xf32>
    %cst_4 = arith.constant 1.000000e+00 : f32
    %7 = vector.broadcast %cst_4 : f32 to vector<8x128xf32>
    %8 = arith.addf %7, %6 : vector<8x128xf32>
    %9 = arith.mulf %3, %3 : vector<8x128xf32>
    %10 = arith.subf %8, %9 : vector<8x128xf32>
    %cst_5 = arith.constant 2.000000e+00 : f32
    %11 = vector.broadcast %cst_5 : f32 to vector<8x128xf32>
    %12 = arith.mulf %11, %4 : vector<8x128xf32>
    %13 = math.exp %12 : vector<8x128xf32>
    %14 = arith.subf %10, %13 : vector<8x128xf32>
    %c0_6 = arith.constant 0 : index
    %c0_7 = arith.constant 0 : index
    %15 = vector.load %arg4[%c0_6, %c0_7] : memref<8x128xf32, #tpu.memory_space<vmem>>, vector<8x128xf32>
    %16 = arith.addf %15, %14 : vector<8x128xf32>
    %c0_8 = arith.constant 0 : index
    %c0_9 = arith.constant 0 : index
    %17 = vector.load %arg4[%c0_8, %c0_9] : memref<8x128xf32, #tpu.memory_space<vmem>>, vector<8x128xf32>
    tpu.vector_store %arg4[%c0_8, %c0_9], %16 {strides = array<i32>} : memref<8x128xf32, #tpu.memory_space<vmem>>, vector<8x128xf32>,
    %c0_i32_10 = arith.constant 0 : i32
    %18 = arith.cmpi eq, %arg0, %c0_i32_10 : i32
    %19 = arith.extui %18 : i1 to i32
    %c0_i32_11 = arith.constant 0 : i32
    %20 = arith.cmpi ne, %19, %c0_i32_11 : i32
    scf.if %20 {
      %c0_12 = arith.constant 0 : index
      %c0_13 = arith.constant 0 : index
      %21 = vector.load %arg4[%c0_12, %c0_13] : memref<8x128xf32, #tpu.memory_space<vmem>>, vector<8x128xf32>
      %22 = vector.shape_cast %21 : vector<8x128xf32> to vector<1x8x128xf32>
      %cst_14 = arith.constant dense<0.000000e+00> : vector<1xf32>
      %23 = vector.multi_reduction <add>, %22, %cst_14 [1, 2] : vector<1x8x128xf32> to vector<1xf32>
      %24 = vector.shape_cast %23 : vector<1xf32> to vector<1x1x1xf32>
      %25 = vector.extract %24[0, 0, 0] : f32 from vector<1x1x1xf32>
      %cst_15 = arith.constant -6.250000e-02 : f32
      %26 = arith.mulf %25, %cst_15 : f32
      %27 = vector.broadcast %26 : f32 to vector<1x1xf32>
      %c0_16 = arith.constant 0 : index
      %c0_17 = arith.constant 0 : index
      %28 = vector.load %arg3[%c0_16, %c0_17] : memref<1x1xf32, #tpu.memory_space<vmem>>, vector<1x1xf32>
      tpu.vector_store %arg3[%c0_16, %c0_17], %27 {strides = array<i32>} : memref<1x1xf32, #tpu.memory_space<vmem>>, vector<1x1xf32>,
    } else {
    }
    return
  }
  func.func @transform_0(%arg0: i32) -> (i32, i32) {
    %c0_i32 = arith.constant 0 : i32
    %c0_i32_0 = arith.constant 0 : i32
    return %arg0, %c0_i32 : i32, i32
  }
  func.func @transform_1(%arg0: i32) -> (i32, i32) {
    %c0_i32 = arith.constant 0 : i32
    %c0_i32_0 = arith.constant 0 : i32
    return %arg0, %c0_i32 : i32, i32
  }
  func.func @transform_2(%arg0: i32) -> (i32, i32) {
    %c0_i32 = arith.constant 0 : i32
    %c0_i32_0 = arith.constant 0 : i32
    %c0_i32_1 = arith.constant 0 : i32
    return %c0_i32, %c0_i32_0 : i32, i32
  }
}

</mosaic_0001>

<bundles_post_ra>
// kernel: tpu_custom_call.1
= control target key start
LH: loop header
LB: loop body
LE: loop exit
PB: predicated region body
PF: predicated region fallthrough
CT: control target
= control target key end

     0   :  { %7 = vsyncpa [#allocation4], 0  ;;  %s219_s0 = inlined_call_operand.hbm [shape: f32[8,128], index: 0, kind: input, shape index: {}]   ;;  %s220_s1 = inlined_call_operand.hbm [shape: f32[8,128], index: 1, kind: input, shape index: {}]   ;;  %s221_s2 = inlined_call_operand.hbm [shape: f32[1,1], index: 2, kind: output, shape index: {}]  }
   0x1   :  { %8 = vsyncpa [#allocation7], 0 }
   0x2   :  { %9 = vsyncpa [#allocation5], 0  ;;  %s165_s9 = smov [#allocation3]   ;;  %s166_s11 = smov [#allocation6]  }
   0x3   :  { %s16_s10 = sshll.u32 %s165_s9, 4  ;;  %s26_s12 = sshll.u32 %s166_s11, 4  ;;  %s17_s10 = int_to_ptr.vmem [resolvable:$true] %s16_s10  ;;  %s27_s12 = int_to_ptr.vmem [resolvable:$true] %s26_s12 }
   0x4   :  { %s93_s15 = scalar_lea.hbm %s219_s0, 128 }
   0x5   :  { %p94_p0 = scmp.ne.s32.totalorder %s219_s0, %s93_s15  ;;  %p97_p1 = scmp.lt.u32.totalorder %s93_s15, %s219_s0 }
   0x7   :  { %p99_p2 = pnand %p97_p1, %p94_p0 }
   0x9   :  { %102 = shalt.err (!%p99_p2)
}
   0xa   :  { %s103_s20 = scalar_lea.vmem %s17_s10, 128  ;;  %p108_p4 = scmp.lt.s32.totalorder %s17_s10, %s17_s10 }
   0xb   :  { %p104_p3 = scmp.ne.s32.totalorder %s17_s10, %s103_s20  ;;  %p109_p5 = scmp.lt.s32.totalorder %s103_s20, %s103_s20 }
   0xd   :  { %p110_p6 = por %p109_p5, %p108_p4 }
   0xf   :  { %p111_p7 = pnand %p110_p6, %p104_p3 }
  0x11   :  { %114 = shalt.err (!%p111_p7)
}
  0x12   :  { %19 = dma.hbm_to_vmem [thread:$0]  %s219_s0, 128, %s17_s10, [#allocation4]  }
  0x13   :  { %s115_s25 = scalar_lea.hbm %s220_s1, 128 }
  0x14   :  { %p116_p8 = scmp.ne.s32.totalorder %s220_s1, %s115_s25  ;;  %p119_p9 = scmp.lt.u32.totalorder %s115_s25, %s220_s1 }
  0x16   :  { %p121_p10 = pnand %p119_p9, %p116_p8 }
  0x18   :  { %124 = shalt.err (!%p121_p10)
}
  0x19   :  { %s125_s30 = scalar_lea.vmem %s27_s12, 128  ;;  %p130_p12 = scmp.lt.s32.totalorder %s27_s12, %s27_s12 }
  0x1a   :  { %p126_p11 = scmp.ne.s32.totalorder %s27_s12, %s125_s30  ;;  %p131_p13 = scmp.lt.s32.totalorder %s125_s30, %s125_s30 }
  0x1c   :  { %p132_p0 = por %p131_p13, %p130_p12 }
  0x1e   :  { %p133_p1 = pnand %p132_p0, %p126_p11 }
  0x20   :  { %136 = shalt.err (!%p133_p1)
}
  0x21   :  { %29 = dma.hbm_to_vmem [thread:$0]  %s220_s1, 128, %s27_s12, [#allocation7]  }
  0x22   :  { %159 = dma.done.wait [#allocation4], 128  }
  0x23   :  { %160 = vsyncadd [#allocation4], 4294967168 }
  0x24   :  { %161 = dma.done.wait [#allocation7], 128  }
  0x25   :  { %162 = vsyncadd [#allocation7], 4294967168  ;;  %v42_v0 = vld [vmem:[#allocation6] sm:$0xff]  ;;  %v41_v3 = vld [vmem:[#allocation3] sm:$0xff]  ;;  %s167_s1 = smov [#allocation8]   ;;  %vm68_vm0 = vcmask 0  }
  0x26   :  { %v43_v1 = vmul.f32 2.0, %v42_v0  ;;  %v45_v5 = vmul.f32 %v41_v3, %v41_v3  ;;  %s76_s4 = sshll.u32 %s167_s1, 4  ;;  %s77_s4 = int_to_ptr.vmem [resolvable:$true] %s76_s4 }
  0x27   :  { %s137_s7 = scalar_lea.vmem %s77_s4, 16  ;;  %s141_s8 = scalar_lea.vmem %s77_s4, 32 }
  0x28   :  { %v47_v2 = vmul.f32 1.442695, %v43_v1  ;;  %v44_v4 = vadd.f32 1.0, %v43_v1  ;;  %p138_p2 = scmp.ne.s32.totalorder %s77_s4, %s137_s7  ;;  %p142_p3 = scmp.lt.s32.totalorder %s77_s4, %s77_s4 }
  0x29   :  { %p143_p4 = scmp.lt.s32.totalorder %s141_s8, %s137_s7 }
  0x2a   :  { %91 = vpow2.f32 %v47_v2  ;;  %v46_v6 = vsub.f32 %v44_v4, %v45_v5 }
  0x2b   :  { %p144_p5 = por %p143_p4, %p142_p3 }
  0x2d   :  { %p145_p6 = pnand %p144_p5, %p138_p2 }
  0x34   :  { %v92_v7 = vpop.eup %91 }
  0x35   :  { %v49_v8 = vsub.f32 %v46_v6, %v92_v7 }
  0x37   :  { %57 = vadd.xlane.f32.xlu0 %v49_v8 }
  0xc4   :  { %v58_v9 = vpop.xlane.xlu0 %57 }
  0xc5   :  { %v59_v10 = vrot.slane %v58_v9, 4 }
  0xc7   :  { %v60_v11 = vadd.f32 %v59_v10, %v58_v9 }
  0xc9   :  { %v61_v12 = vrot.slane %v60_v11, 2 }
  0xcb   :  { %v62_v13 = vadd.f32 %v61_v12, %v60_v11 }
  0xcd   :  { %v63_v14 = vrot.slane %v62_v13, 1 }
  0xcf   :  { %v64_v15 = vadd.f32 %v63_v14, %v62_v13 }
  0xd1   :  { %86 = vpush %v64_v15 }
 0x102   :  { %s87_s5 = spop %86 }
 0x103   :  { %s66_s6 = smul.f32 -0.0625, %s87_s5 }
 0x105   :  { %v67_v16 = vstv %s66_s6 }
 0x106   :  { %69 = vst.msk [vmem:[#allocation8] sm:$0x1] %vm68_vm0, %v67_v16 }
 0x107   :  { %148 = shalt.err (!%p145_p6)
}
 0x108   :  { %s149_s11 = scalar_lea.hbm %s221_s2, 16 }
 0x109   :  { %p150_p7 = scmp.ne.s32.totalorder %s221_s2, %s149_s11  ;;  %p153_p8 = scmp.lt.u32.totalorder %s149_s11, %s221_s2 }
 0x10b   :  { %p155_p9 = pnand %p153_p8, %p150_p7 }
 0x10d   :  { %158 = shalt.err (!%p155_p9)
}
 0x10e   :  { %79 = dma.vmem_to_hbm [thread:$0]  %s77_s4, 16, %s221_s2, [#allocation5]  }
 0x10f   :  { %163 = dma.done.wait [#allocation5], 16  }
 0x110   :  { %164 = vsyncadd [#allocation5], 4294967280 }
 0x111   :  { %83 = vsyncpa [#allocation4], 1 }
 0x112   :  { %84 = vsyncpa [#allocation7], 1 }
 0x113   :  { %85 = vsyncpa [#allocation5], 1 }

</bundles_post_ra>
